<compile_context>
chip_gen: v7x
topology: tpu7x:2x2x1
jax: 0.10.0
libtpu: 0.0.40
codegen_flags: <defaults>
</compile_context>

<pallas_src>
import math

import jax
import jax.numpy as jnp
from jax.experimental import pallas as pl
from jax.experimental.pallas import tpu as pltpu


def _patch_unembed_kernel(x_ref, w_ref, b_ref, o_ref):
    # x_ref: (1, C_in, T)   w_ref: (C_out, C_in)   b_ref: (C_out, 1)   o_ref: (1, C_out, T)
    acc = jnp.dot(w_ref[...], x_ref[0],
                  preferred_element_type=jnp.float32)           # (C_out, T) f32 accum
    acc = acc + b_ref[...].astype(jnp.float32)                  # bias broadcast over lanes
    o_ref[0] = acc.astype(o_ref.dtype)


def _round_up(x, m):
    return ((x + m - 1) // m) * m


def _tile_cap():
    """Per-generation cap on the HW lane tile.

    8192 lanes -> ~9 MiB of double-buffered blocks (fits v5e's 16 MiB scoped-VMEM
    default with no override). On v6e / v7x (32 MiB scoped default; v7x's 3.2 TB/s
    HBM makes per-step fixed cost proportionally worse) allow 16384 (~18 MiB).
    """
    cap = 8192
    try:
        kind = jax.devices()[0].device_kind.lower()
        if not any(old in kind for old in ("v2", "v3", "v4", "v5")):
            cap = 16384
    except Exception:
        pass
    return cap


def _pick_hw_tile(hw, batch, cap):
    """Lane tile along flattened H*W.

    Returns either a multiple of 128 (ragged tail handled by a cdiv grid + masked
    stores) or the full extent when HW < 128 (full-dim blocks are always legal).
    """
    if hw < 128:
        return hw
    # Keep >= ~8 total grid steps when HW allows: feeds both v7x TCs and keeps the
    # software pipeline deep even for small batch sizes.
    min_steps = max(1, 8 // max(batch, 1))
    tile = min(cap, _round_up(pl.cdiv(hw, min_steps), 128))
    tile = min(tile, (hw // 128) * 128)
    return max(tile, 128)


def patch_unembed(x, w, b, *, patch_size=4, out_chans=3):
    """PatchUnEmbed forward (kernel_size=1 path): 1x1 conv (Pallas) + PixelShuffle.

    x: (B, C_in, H, W);  w: (out_chans*patch_size**2, C_in);  b: (out_chans*patch_size**2,)
    Works for f32 or bf16 inputs (MXU accumulation is always f32).
    """
    B, C_in, H, W = x.shape
    C_out = out_chans * patch_size ** 2
    assert w.shape == (C_out, C_in)
    assert b.shape == (C_out,)

    HW = H * W
    cap = _tile_cap()
    tile = _pick_hw_tile(HW, B, cap)
    n_tiles = pl.cdiv(HW, tile)

    x2 = x.reshape(B, C_in, HW)          # contiguous reshape, no HBM copy
    b2 = b.reshape(C_out, 1)

    y = pl.pallas_call(
        _patch_unembed_kernel,
        out_shape=jax.ShapeDtypeStruct((B, C_out, HW), x.dtype),
        grid=(B, n_tiles),
        in_specs=[
            pl.BlockSpec((1, C_in, tile), lambda bi, ti: (bi, 0, ti)),
            pl.BlockSpec((C_out, C_in), lambda bi, ti: (0, 0)),   # VMEM-resident weights
            pl.BlockSpec((C_out, 1), lambda bi, ti: (0, 0)),      # VMEM-resident bias
        ],
        out_specs=pl.BlockSpec((1, C_out, tile), lambda bi, ti: (bi, 0, ti)),
        compiler_params=pltpu.CompilerParams(
            dimension_semantics=("parallel", "parallel"),
            # Only needed when the per-chip gate picks the 16384-lane tile (~18 MiB
            # of double-buffered blocks); harmless headroom otherwise.
            vmem_limit_bytes=(40 << 20) if tile > 8192 else None,
        ),
    )(x2, w, b2)

    # PixelShuffle(patch_size): pure permutation, done as an XLA transpose.
    # TODO(synk): fuse this into the kernel's output store (lane interleave of px).
    y = y.reshape(B, out_chans, patch_size, patch_size, H, W)
    y = y.transpose(0, 1, 4, 2, 5, 3)
    return y.reshape(B, out_chans, H * patch_size, W * patch_size)


def patch_unembed_reference(x, w, b, *, patch_size=4, out_chans=3):
    """Pure-JAX reference mirroring the PyTorch forward (1x1 conv + PixelShuffle)."""
    B, C_in, H, W = x.shape
    y = jnp.einsum('oc,bchw->bohw', w.astype(jnp.float32), x.astype(jnp.float32))
    y = y + b.astype(jnp.float32)[None, :, None, None]
    y = y.reshape(B, out_chans, patch_size, patch_size, H, W)
    y = y.transpose(0, 1, 4, 2, 5, 3)
    return y.reshape(B, out_chans, H * patch_size, W * patch_size)


if __name__ == "__main__":
    B, H, W = 2, 16, 16
    embed_dim, out_chans, patch_size = 96, 3, 4
    C_out = out_chans * patch_size ** 2                       # 48

    key = jax.random.PRNGKey(0)
    k1, k2, k3 = jax.random.split(key, 3)

    x = jax.random.normal(k1, (B, embed_dim, H, W), jnp.float32)

    # Conv2d(embed_dim, C_out, 1) default init: uniform in +-1/sqrt(fan_in)
    bound = 1.0 / math.sqrt(embed_dim)
    w = jax.random.uniform(k2, (C_out, embed_dim), jnp.float32, -bound, bound)
    b = jax.random.uniform(k3, (C_out,), jnp.float32, -bound, bound)

    # f32 path
    out = patch_unembed(x, w, b, patch_size=patch_size, out_chans=out_chans)
    out = jax.block_until_ready(out)
    ref = patch_unembed_reference(x, w, b, patch_size=patch_size, out_chans=out_chans)
    assert out.shape == (B, out_chans, H * patch_size, W * patch_size)
    assert jnp.allclose(out, ref, atol=1e-5, rtol=1e-5), "f32 mismatch vs reference"

    # bf16 path (halves HBM traffic on this memory-bound op; f32 accumulation inside)
    xb, wb, bb = x.astype(jnp.bfloat16), w.astype(jnp.bfloat16), b.astype(jnp.bfloat16)
    out_bf16 = patch_unembed(xb, wb, bb, patch_size=patch_size, out_chans=out_chans)
    out_bf16 = jax.block_until_ready(out_bf16)
    ref_bf16 = patch_unembed_reference(xb, wb, bb, patch_size=patch_size,
                                       out_chans=out_chans)
    assert out_bf16.dtype == jnp.bfloat16
    assert jnp.allclose(out_bf16.astype(jnp.float32), ref_bf16, atol=2e-2, rtol=2e-2), \
        "bf16 mismatch vs reference"

    print("KERNEL_OK")
</pallas_src>

<mosaic_0001>
module attributes {stable_mosaic.version = 11 : i64} {
  func.func @_patch_unembed_kernel(%arg0: i32, %arg1: i32, %arg2: memref<1x96x128xf32, #tpu.memory_space<vmem>>, %arg3: memref<48x96xf32, #tpu.memory_space<vmem>>, %arg4: memref<48x1xf32, #tpu.memory_space<vmem>>, %arg5: memref<1x48x128xf32, #tpu.memory_space<vmem>>) attributes {dimension_semantics = [#tpu.dimension_semantics<parallel>, #tpu.dimension_semantics<parallel>], iteration_bounds = array<i64: 2, 2>, scalar_prefetch = 0 : i64, scratch_operands = 0 : i64, tpu.core_type = #tpu.core_type<tc>, window_params = [{transform_indices = @transform_0, window_bounds = array<i64: 1, 96, 128>}, {pipeline_mode = #tpu.pipeline_mode<synchronous>, transform_indices = @transform_1, window_bounds = array<i64: 48, 96>}, {pipeline_mode = #tpu.pipeline_mode<synchronous>, transform_indices = @transform_2, window_bounds = array<i64: 48, 1>}, {transform_indices = @transform_3, window_bounds = array<i64: 1, 48, 128>}]} {
    %c0 = arith.constant 0 : index
    %c0_0 = arith.constant 0 : index
    %0 = vector.load %arg3[%c0, %c0_0] : memref<48x96xf32, #tpu.memory_space<vmem>>, vector<48x96xf32>
    %c0_1 = arith.constant 0 : index
    %c0_2 = arith.constant 0 : index
    %c0_3 = arith.constant 0 : index
    %1 = vector.load %arg2[%c0_1, %c0_2, %c0_3] : memref<1x96x128xf32, #tpu.memory_space<vmem>>, vector<1x96x128xf32>
    %2 = vector.shape_cast %1 : vector<1x96x128xf32> to vector<96x128xf32>
    %cst = arith.constant dense<0.000000e+00> : vector<48x128xf32>
    %3 = tpu.matmul %0, %2, %cst {dimension_numbers = #tpu.dot_dimension_numbers<[1], [0], [0], [1], [0, 0, 1, 1], [], []>} : vector<48x96xf32>, vector<96x128xf32>, vector<48x128xf32> -> vector<48x128xf32>
    %c0_4 = arith.constant 0 : index
    %c0_5 = arith.constant 0 : index
    %4 = vector.load %arg4[%c0_4, %c0_5] : memref<48x1xf32, #tpu.memory_space<vmem>>, vector<48x1xf32>
    %5 = vector.broadcast %4 : vector<48x1xf32> to vector<48x128xf32>
    %6 = arith.addf %3, %5 : vector<48x128xf32>
    %c0_6 = arith.constant 0 : index
    %c0_7 = arith.constant 0 : index
    %c0_8 = arith.constant 0 : index
    %7 = vector.load %arg5[%c0_6, %c0_7, %c0_8] : memref<1x48x128xf32, #tpu.memory_space<vmem>>, vector<1x48x128xf32>
    %8 = vector.shape_cast %7 : vector<1x48x128xf32> to vector<48x128xf32>
    %9 = vector.shape_cast %6 : vector<48x128xf32> to vector<1x48x128xf32>
    tpu.vector_store %arg5[%c0_6, %c0_7, %c0_8], %9 {strides = array<i32>} : memref<1x48x128xf32, #tpu.memory_space<vmem>>, vector<1x48x128xf32>,
    return
  }
  func.func @transform_0(%arg0: i32, %arg1: i32) -> (i32, i32, i32) {
    %c0_i32 = arith.constant 0 : i32
    %c0_i32_0 = arith.constant 0 : i32
    return %arg0, %c0_i32, %arg1 : i32, i32, i32
  }
  func.func @transform_1(%arg0: i32, %arg1: i32) -> (i32, i32) {
    %c0_i32 = arith.constant 0 : i32
    %c0_i32_0 = arith.constant 0 : i32
    %c0_i32_1 = arith.constant 0 : i32
    return %c0_i32, %c0_i32_0 : i32, i32
  }
  func.func @transform_2(%arg0: i32, %arg1: i32) -> (i32, i32) {
    %c0_i32 = arith.constant 0 : i32
    %c0_i32_0 = arith.constant 0 : i32
    %c0_i32_1 = arith.constant 0 : i32
    return %c0_i32, %c0_i32_0 : i32, i32
  }
  func.func @transform_3(%arg0: i32, %arg1: i32) -> (i32, i32, i32) {
    %c0_i32 = arith.constant 0 : i32
    %c0_i32_0 = arith.constant 0 : i32
    return %arg0, %c0_i32, %arg1 : i32, i32, i32
  }
}

</mosaic_0001>

<bundles_post_ra>
// kernel: tpu_custom_call.1
= control target key start
LH: loop header
LB: loop body
LE: loop exit
PB: predicated region body
PF: predicated region fallthrough
CT: control target
= control target key end

     0   :  { %8 = vsyncpa [#allocation3], 0  ;;  %s1088_s0 = inlined_call_operand.hbm [shape: f32[2,96,256], index: 0, kind: input, shape index: {}]   ;;  %s1089_s1 = inlined_call_operand.vmem [shape: f32[48,96], index: 1, kind: input, shape index: {}]   ;;  %s1090_s2 = inlined_call_operand.vmem [shape: f32[48,1], index: 2, kind: input, shape index: {}]   ;;  %s1091_s3 = inlined_call_operand.hbm [shape: f32[2,48,256], index: 3, kind: output, shape index: {}]  }
   0x1   :  { %10 = vsyncpa [#allocation3 + $0x1], 0 }
   0x2   :  { %11 = vsyncpa [#allocation4], 0 }
   0x3   :  { %13 = vsyncpa [#allocation4 + $0x1], 0  ;;  %s836_s12 = smov 0   ;;  %s838_s13 = smov 0  }
   0x4   :  { %s840_s14 = smov 0   ;;  %s842_s15 = smov 0  }
   0x5   :  { %s844_s16 = smov 0   ;;  %s846_s17 = smov 0  }
   0x6   :  { %s848_s18 = smov 0   ;;  %s850_s19 = smov 0  }
   0x7 LB: > { %s483_s20 = sadd.s32 4294967295, %s805_s19   ;;  %s484_s21 = sadd.s32 4294967294, %s805_s19   ;;  %s805_s19 = sphi %s850_s19, %s19_s19   ;;  %s801_s18 = sphi %s848_s18, %s1106_s18   ;;  %s797_s17 = sphi %s846_s17, %s1105_s17   ;;  %s793_s16 = sphi %s844_s16, %s1104_s16   ;;  %s789_s15 = sphi %s842_s15, %s1103_s15   ;;  %s785_s14 = sphi %s840_s14, %s1102_s14   ;;  %s781_s13 = sphi %s838_s13, %s1101_s13   ;;  %s777_s12 = sphi %s836_s12, %s1100_s12  }
   0x8   : > { %s28_s22 = sadd.s32 1, %s797_s17  ;;  %s31_s23 = sadd.s32 1, %s801_s18 }
   0x9   : > { %p29_p0 = scmp.ge.s32.totalorder %s28_s22, 2  ;;  %s40_s24 = sadd.s32 1, %s785_s14 }
   0xa   : > { %p47_p1 = scmp.ne.s32.totalorder %s785_s14, %s781_s13  ;;  %p48_p2 = scmp.eq.s32.totalorder %s805_s19, 0 }
   0xb   : > { %s1108_s22 = smov (%p29_p0, %s28_s22), 0  ;;  %s1110_s23 = smov (!%p29_p0, %s31_s23), %s801_s18 }
   0xc   : > { %s36_s25 = ssub.s32 %s797_s17, %s1108_s22  ;;  %p889_p3 = por %p48_p2, %p47_p1 }
   0xd   : > { %p33_p4 = scmp.ge.s32.totalorder %s1110_s23, 2  ;;  %p53_p5 = scmp.ne.s32.totalorder %s781_s13, %s777_s12 }
   0xe   : > { %p54_p6 = scmp.eq.s32.totalorder %s483_s20, 0  ;;  %p121_p7 = scmp.eq.s32.totalorder %s483_s20, 3 }
   0xf   : > { %s1112_s23 = smov (%p33_p4, %s1110_s23), 0  ;;  %p127_p10 = scmp.eq.s32.totalorder %s484_s21, 3 }
  0x10   : > { %p897_p8 = por %p54_p6, %p53_p5  ;;  %p901_p9 = por %p121_p7, %p47_p1 }
  0x11   : > { %s35_s29 = ssub.s32 %s801_s18, %s1112_s23  ;;  %p907_p12 = por %p127_p10, %p53_p5 }
  0x12   : > { %s1095_s28 = scalar_select %p901_p9, 1, 0 }
  0x13   : > { %s37_s30 = sor.u32 %s36_s25, %s35_s29  ;;  %p602_p13 = scmp.lt.s32.totalorder %s805_s19, 4 }
  0x14   : > { %p38_p11 = scmp.eq.s32.totalorder %s37_s30, 0  ;;  %s153_s5 = sand.u32 1, %s785_s14  }
  0x15   : > { %s1096_s4 = scalar_select %p907_p12, 1, 0 }
  0x16   : > { %s914_s6 = scalar_select %p38_p11, %s785_s14, %s40_s24  }
  0x17   : > { %s585_s7 = smul.u32 96, %s153_s5  ;;  %p919_p0 = pnand %p602_p13, %p889_p3 }
  0x18   : > { %s586_s8 = smul.u32 24, %s801_s18  ;;  %s931_s26 = scalar_lea.sflag [#allocation3], %s153_s5 }
  0x19   : > { %s157_s11 = scalar_lea.vmem [#allocation2], %s585_s7  ;;  %p679_p2 = pneg %p919_p0 }
  0x1a   : > { %s162_s10 = sadd.s32 %s797_s17, %s586_s8  ;;  %s165_s20 = sshll.u32 %s157_s11, 4  ;;  %s924_s20 = int_to_ptr.vmem [resolvable:$true] %s165_s20 }
  0x1b   : > { %s487_s21 = sshll.u32 %s162_s10, 7  ;;  %s682_s10 = scalar_lea.hbm %s1088_s0, 6144 }
  0x1c   : > { %s929_s24 = scalar_lea.hbm %s1088_s0, %s487_s21 }
  0x1d   : > { %s677_s30 = scalar_lea.hbm %s929_s24, 1536  ;;  %p683_p5 = scmp.lt.u32.totalorder %s929_s24, %s1088_s0 }
  0x1e   : > { %p678_p1 = scmp.ne.s32.totalorder %s929_s24, %s677_s30  ;;  %p684_p6 = scmp.lt.u32.totalorder %s682_s10, %s677_s30 }
  0x1f   : > { %p686_p10 = scmp.lt.u32.totalorder %s677_s30, %s929_s24 }
  0x20   : > { %p680_p3 = pnand %p679_p2, %p678_p1  ;;  %p685_p7 = por %p684_p6, %p683_p5 }
  0x22   : > { %p681_p4 = pneg %p680_p3  ;;  %p687_p11 = por %p686_p10, %p685_p7 }
  0x24   : > { %p688_p13 = pnand %p687_p11, %p681_p4 }
  0x26   : > { %691 = shalt.err (!%p688_p13)
}
  0x27   : > { %s692_s5 = scalar_lea.vmem %s924_s20, 1536  ;;  %s807_s25 = smov [#allocation2]  }
  0x28   : > { %p693_p1 = scmp.ne.s32.totalorder %s924_s20, %s692_s5  ;;  %s697_s29 = sshll.u32 %s807_s25, 4  ;;  %s698_s29 = int_to_ptr.vmem [resolvable:$false] %s697_s29 }
  0x29   : > { %s699_s7 = scalar_lea.vmem %s698_s29, 3072  ;;  %p700_p9 = scmp.lt.s32.totalorder %s924_s20, %s698_s29 }
  0x2a   : > { %p695_p3 = pnand %p693_p1, %p679_p2  ;;  %p701_p5 = scmp.lt.s32.totalorder %s699_s7, %s692_s5 }
  0x2c   : > { %p696_p12 = pneg %p695_p3  ;;  %p702_p6 = por %p701_p5, %p700_p9 }
  0x2e   : > { %p703_p7 = pnand %p702_p6, %p696_p12 }
  0x30   : > { %706 = shalt.err (!%p703_p7)
}
  0x31   : > { %s808_s30 = smov 256   ;;  %s809_s8 = smov 128  }
  0x32   : > { %s810_s10 = smov 8   ;;  %p488_p2 = scmp.ge.s32.totalorder %s805_s19, 1 }
  0x33   : > { %597 = dma.hbm_to_vmem [thread:$0]  (!%p919_p0), %s929_s24, 1536, %s924_s20, %s931_s26, %s808_s30, %s809_s8, %s810_s10  }
  0x34   : > { %p173_p4 = scmp.lt.s32.totalorder %s805_s19, 5 }
  0x36   : > { %p174_p10 = pnand %p488_p2, %p173_p4 }
  0x37   : > { %s962_s11 = sand.u32 (!%p174_p10), 1, %s781_s13  }
  0x38   : > { %177 = sbr.rel (%p174_p10) target bundleno = 326 (0x146), region = 32  ;;  %s180_s5 = scalar_lea.sflag (!%p174_p10), [#allocation3], %s962_s11 }
  0x39   : > { %s587_s21 = smul.u32 (!%p174_p10), 96, %s962_s11 }
  0x3b   : > { %s966_s25 = scalar_lea.vmem (!%p174_p10), [#allocation2], %s587_s21 }
  0x3f   : > { %768 = dma.done.wait (%p897_p8), %s180_s5, 1536  }
  0x40   : > { %770 = vsyncadd (%p897_p8), %s180_s5, 4294965760  ;;  %v811_v0 = vmov 0   ;;  %v212_v1 = vld [vmem:[%s966_s25] sm:$0xff]  ;;  %v213_v2 = vld [vmem:[%s966_s25 + $0x8] sm:$0xff]  ;;  %vm260_vm0 = vcmask 785408   ;;  %s589_s5 = smul.u32 12, %s793_s16 }
  0x41   : > { %676 = vset.pattern.permute.xlu1 %v811_v0  ;;  %675 = vset.pattern.permute.xlu0 %v811_v0  ;;  %v214_v3 = vld [vmem:[%s966_s25 + $0x10] sm:$0xff]  ;;  %v549_v4 = vpack.c.bf16 %v213_v2, %v212_v1  ;;  %v215_v5 = vld [vmem:[%s966_s25 + $0x18] sm:$0xff]  ;;  %v216_v7 = vld [vmem:[%s966_s25 + $0x20] sm:$0xff]  ;;  %s588_s27 = smul.u32 48, %s962_s11  ;;  %p1098_p9 = scmp.ne.s32.totalorder %s1095_s28, 0 }
  0x42   : > { %v553_v6 = vpack.c.bf16 %v215_v5, %v214_v3  ;;  %v217_v8 = vld [vmem:[%s966_s25 + $0x28] sm:$0xff]  ;;  %v206_v9 = vld [vmem:[%s1089_s1] sm:$0xff]  ;;  %v208_v10 = vld [vmem:[%s1089_s1 + $0x10] sm:$0xff]  ;;  %s392_s9 = sadd.s32 %s789_s15, %s589_s5  ;;  %s812_s30 = smov [#allocation5]  }
  0x43   : > { %550 = vmatprep.subr.bf16.mxu0 %v549_v4  ;;  %573 = vmatprep.subr.bf16.mxu1 %v549_v4  ;;  %v557_v11 = vpack.c.bf16 %v217_v8, %v216_v7  ;;  %v218_v12 = vld [vmem:[%s966_s25 + $0x30] sm:$0xff]  ;;  %v219_v13 = vld [vmem:[%s966_s25 + $0x38] sm:$0xff]  ;;  %v224_v15 = vld [vmem:[%s1090_s2] sm:$0xff]  ;;  %s205_s20 = scalar_lea.vmem [#allocation5], %s588_s27  ;;  %s495_s26 = sshll.u32 %s392_s9, 7 }
  0x44   : > { %552 = vmatpush3.bf16.msra.mxu0 %v549_v4  ;;  %579 = vmatpush3.bf16.msra.mxu1 %v549_v4  ;;  %v226_v14 = vld [vmem:[%s1090_s2 + $0x10] sm:$0xff]  ;;  %v227_v16 = vld [vmem:[%s1090_s2 + $0x18] sm:$0xff]  ;;  %v225_v17 = vld [vmem:[%s1090_s2 + $0x8] sm:$0xff]  ;;  %v561_v18 = vpack.c.bf16 %v219_v13, %v218_v12  ;;  %s395_s24 = sshll.u32 %s205_s20, 4  ;;  %s1034_s29 = scalar_lea.hbm %s1091_s3, %s495_s26  ;;  %s1029_s24 = int_to_ptr.vmem [resolvable:$true] %s395_s24 }
  0x45   : > { %554 = vmatprep.subr.bf16.mxu0 %v553_v6  ;;  %574 = vmatprep.subr.bf16.mxu1 %v553_v6  ;;  %v220_v19 = vld [vmem:[%s966_s25 + $0x40] sm:$0xff]  ;;  %v221_v20 = vld [vmem:[%s966_s25 + $0x48] sm:$0xff]  ;;  %v222_v24 = vld [vmem:[%s966_s25 + $0x50] sm:$0xff]  ;;  %s707_s7 = scalar_lea.vmem %s1029_s24, 768  ;;  %s711_s8 = sshll.u32 %s812_s30, 4  ;;  %s712_s8 = int_to_ptr.vmem [resolvable:$false] %s711_s8 }
  0x46   : > { %540 = vmatprep.mubr.msk.f32.mxu0 %vm260_vm0, %v206_v9  ;;  %543 = vmatprep.mubr.msk.f32.mxu1 %vm260_vm0, %v208_v10  ;;  %v229_v21 = vld [vmem:[%s1090_s2 + $0x28] sm:$0xff]  ;;  %v228_v22 = vld [vmem:[%s1090_s2 + $0x20] sm:$0xff]  ;;  %v565_v23 = vpack.c.bf16 %v221_v20, %v220_v19  ;;  %v223_v25 = vld [vmem:[%s966_s25 + $0x58] sm:$0xff]  ;;  %s381_s25 = scalar_lea.sflag [#allocation4], %s962_s11  ;;  %p708_p8 = scmp.ne.s32.totalorder %s1029_s24, %s707_s7 }
  0x47   : > { %242 = vperm.xlu1 %676, %v226_v14   ;;  %232 = vperm.xlu0 %675, %v224_v15   ;;  %v569_v26 = vpack.c.bf16 %v223_v25, %v222_v24  ;;  %v207_v27 = vld [vmem:[%s1089_s1 + $0x8] sm:$0xff]  ;;  %v209_v28 = vld [vmem:[%s1089_s1 + $0x18] sm:$0xff]  ;;  %v210_v29 = vld [vmem:[%s1089_s1 + $0x20] sm:$0xff]  ;;  %s713_s10 = scalar_lea.vmem %s712_s8, 1536  ;;  %p714_p11 = scmp.lt.s32.totalorder %s1029_s24, %s712_s8 }
  0x48   : > { %556 = vmatpush3.bf16.msra.mxu0 %v553_v6  ;;  %580 = vmatpush3.bf16.msra.mxu1 %v553_v6  ;;  %v211_v30 = vld [vmem:[%s1089_s1 + $0x28] sm:$0xff]  ;;  %p709_p12 = pnand %p708_p8, %p1098_p9  ;;  %p715_p13 = scmp.lt.s32.totalorder %s713_s10, %s707_s7 }
  0x49   : > { %558 = vmatprep.subr.bf16.mxu0 %v557_v11  ;;  %575 = vmatprep.subr.bf16.mxu1 %v557_v11 }
  0x4a   : > { %p710_p0 = pneg %p709_p12  ;;  %p716_p1 = por %p715_p13, %p714_p11 }
  0x4b   : > { %247 = vperm.xlu1 %676, %v227_v16   ;;  %237 = vperm.xlu0 %675, %v225_v17  }
  0x4c   : > { %560 = vmatpush3.bf16.msra.mxu0 %v557_v11  ;;  %581 = vmatpush3.bf16.msra.mxu1 %v557_v11  ;;  %p717_p3 = pnand %p716_p1, %p710_p0 }
  0x4d   : > { %562 = vmatprep.subr.bf16.mxu0 %v561_v18  ;;  %576 = vmatprep.subr.bf16.mxu1 %v561_v18 }
  0x4f   : > { %257 = vperm.xlu1 %676, %v229_v21   ;;  %252 = vperm.xlu0 %675, %v228_v22  }
  0x50   : > { %564 = vmatpush3.bf16.msra.mxu0 %v561_v18  ;;  %582 = vmatpush3.bf16.msra.mxu1 %v561_v18 }
  0x51   : > { %566 = vmatprep.subr.bf16.mxu0 %v565_v23  ;;  %577 = vmatprep.subr.bf16.mxu1 %v565_v23 }
  0x54   : > { %568 = vmatpush3.bf16.msra.mxu0 %v565_v23  ;;  %583 = vmatpush3.bf16.msra.mxu1 %v565_v23 }
  0x55   : > { %570 = vmatprep.subr.bf16.mxu0 %v569_v26  ;;  %578 = vmatprep.subr.bf16.mxu1 %v569_v26 }
  0x58   : > { %572 = vmatpush3.bf16.msra.mxu0 %v569_v26  ;;  %584 = vmatpush3.bf16.msra.mxu1 %v569_v26 }
  0x5b   : > { %541 = vmatmul.mubr.msk.f32.vlgmr.msra.gmra.mrb[0].mxu0 %vm260_vm0, %v207_v27  ;;  %544 = vmatmul.mubr.msk.f32.vlgmr.msra.gmra.mrb[0].mxu1 %vm260_vm0, %v209_v28 }
  0x5c   : > { %546 = vmatprep.mubr.msk.f32.mxu1 %vm260_vm0, %v210_v29 }
  0x5f   : > { %547 = vmatmul.mubr.msk.f32.gmra.mrb[2].mxu1 %vm260_vm0, %v211_v30 }
  0xc6   : > { %v243_v31 = vpop.permute.xlu1 %242  ;;  %v233_v32 = vpop.permute.xlu0 %232 }
  0xca   : > { %v248_v33 = vpop.permute.xlu1 %247  ;;  %v238_v34 = vpop.permute.xlu0 %237 }
  0xce   : > { %v258_v43 = vpop.permute.xlu1 %257  ;;  %v253_v45 = vpop.permute.xlu0 %252 }
 0x12e   : > { %v542_v35 = vpop.f32.mrb[0].mxu0  ;;  %v545_v36 = vpop.f32.mrb[0].mxu1 }
 0x12f   : > { %v351_v37 = vadd.f32 %v542_v35, %v238_v34  ;;  %v361_v38 = vadd.f32 %v545_v36, %v248_v33  ;;  %v345_v39 = vpop.f32.mrb[1].mxu0  ;;  %v355_v40 = vpop.f32.mrb[1].mxu1 }
 0x130   : > { %v346_v41 = vadd.f32 %v345_v39, %v233_v32  ;;  %v356_v42 = vadd.f32 %v355_v40, %v243_v31 }
 0x131   : > { %375 = vst [vmem:[%s205_s20 + $0x8] sm:$0xff] %v351_v37  ;;  %377 = vst [vmem:[%s205_s20 + $0x18] sm:$0xff] %v361_v38 }
 0x132   : > { %374 = vst [vmem:[%s205_s20] sm:$0xff] %v346_v41  ;;  %376 = vst [vmem:[%s205_s20 + $0x10] sm:$0xff] %v356_v42  ;;  %v548_v44 = vpop.f32.mrb[2].mxu1 }
 0x133   : > { %v371_v46 = vadd.f32 %v548_v44, %v258_v43  ;;  %v365_v47 = vpop.f32.mrb[3].mxu1 }
 0x134   : > { %v366_v48 = vadd.f32 %v365_v47, %v253_v45 }
 0x135   : > { %379 = vst [vmem:[%s205_s20 + $0x28] sm:$0xff] %v371_v46 }
 0x136   : > { %378 = vst [vmem:[%s205_s20 + $0x20] sm:$0xff] %v366_v48 }
 0x137   : > { %720 = shalt.err (!%p717_p3)
}
 0x138   : > { %s721_s21 = scalar_lea.hbm %s1034_s29, 768  ;;  %s725_s9 = scalar_lea.hbm %s1091_s3, 3072 }
 0x139   : > { %p722_p5 = scmp.ne.s32.totalorder %s1034_s29, %s721_s21  ;;  %p726_p2 = scmp.lt.u32.totalorder %s1034_s29, %s1091_s3 }
 0x13a   : > { %p727_p4 = scmp.lt.u32.totalorder %s725_s9, %s721_s21  ;;  %p729_p8 = scmp.lt.u32.totalorder %s721_s21, %s1034_s29 }
 0x13b   : > { %p723_p6 = pnand %p722_p5, %p1098_p9 }
 0x13c   : > { %p728_p10 = por %p727_p4, %p726_p2 }
 0x13d   : > { %p724_p7 = pneg %p723_p6 }
 0x13e   : > { %p730_p12 = por %p729_p8, %p728_p10 }
 0x140   : > { %p731_p0 = pnand %p730_p12, %p724_p7 }
 0x142   : > { %734 = shalt.err (!%p731_p0)
}
 0x143   : > { %s813_s15 = smov 128   ;;  %s814_s16 = smov 256  }
 0x144   : > { %s815_s7 = smov 8  }
 0x145   : > { %592 = dma.vmem_to_hbm [thread:$0]  (%p1098_p9), %s1029_s24, 768, %s1034_s29, %s381_s25, %s813_s15, %s814_s16, %s815_s7  }
 0x146 PF: > { %p603_p11 = scmp.ge.s32.totalorder %s805_s19, 2  ;;  %s410_s30 = sand.u32 1, %s777_s12  }
 0x147   : > { %p1099_p13 = scmp.ne.s32.totalorder %s1096_s4, 0  ;;  %s411_s8 = scalar_lea.sflag [#allocation4], %s410_s30 }
 0x149   : > { %p599_p1 = pnand %p603_p11, %p1099_p13 }
 0x14b   : > { %772 = dma.done.wait (!%p599_p1), %s411_s8, 768  }
 0x14c   : > { %774 = vsyncadd (!%p599_p1), %s411_s8, 4294966528  ;;  %s19_s19 = sadd.s32 1, %s805_s19   ;;  %s1100_s12 = smov %s781_s13 }
 0x14d   : > { %p16_p3 = scmp.ge.s32.totalorder %s19_s19, 6   ;;  %s1101_s13 = smov %s785_s14 }
 0x14e   : > { %s1102_s14 = smov %s914_s6  ;;  %s1103_s15 = smov %s797_s17 }
 0x14f   : > { %s1104_s16 = smov %s801_s18  ;;  %s1105_s17 = smov %s1108_s22 }
 0x150   : > { %s1106_s18 = smov %s1112_s23  ;;  %18 = sbr.rel (!%p16_p3) target bundleno = 7 (0x7), region = 77 }
 0x157   :  { %416 = vsyncpa [#allocation3], 1 }
 0x158   :  { %418 = vsyncpa [#allocation3 + $0x1], 1 }
 0x159   :  { %419 = vsyncpa [#allocation4], 1 }
 0x15a   :  { %421 = vsyncpa [#allocation4 + $0x1], 1 }

</bundles_post_ra>
